<compile_context>
chip_gen: v6e
topology: v6e:2x2x1
jax: 0.10.0
libtpu: 0.0.40
codegen_flags: <defaults>
</compile_context>

<pallas_src>
import jax
import jax.numpy as jnp
from jax import lax
from jax.experimental import pallas as pl
from jax.experimental.pallas import tpu as pltpu


def _round_up(x, m):
    return (x + m - 1) // m * m


def _make_loss_kernel(v_real, n_real):
    """Training path: embedding gather (one-hot matmul) + cross entropy."""

    def loss_kernel(ids_ref, table_ref, logits_ref, loss_ref):
        tile_n, v_pad = logits_ref.shape
        ids = ids_ref[...]                                   # (tile_n, 2) int32
        tok = ids[:, 0:1]                                    # (tile_n, 1)
        tgt = ids[:, 1:2]                                    # (tile_n, 1)

        lane = lax.broadcasted_iota(jnp.int32, (tile_n, v_pad), 1)

        # Embedding lookup as a one-hot MXU matmul (V_pad == one MXU tile).
        one_hot = (lane == tok).astype(table_ref.dtype)      # (tile_n, v_pad)
        logits = jnp.dot(one_hot, table_ref[...],
                         preferred_element_type=jnp.float32,
                         precision=lax.Precision.HIGHEST)    # exact gather
        # Single full-tile, lane-dense store; keep the value for the loss math.
        logits_ref[...] = logits.astype(logits_ref.dtype)

        # Cross entropy: mask padded vocab lanes out of the logsumexp.
        masked = jnp.where(lane < v_real, logits, -1e30)
        m = jnp.max(masked, axis=-1, keepdims=True)
        lse = jnp.log(jnp.sum(jnp.exp(masked - m), axis=-1, keepdims=True)) + m
        tgt_logit = jnp.sum(jnp.where(lane == tgt, logits, 0.0),
                            axis=-1, keepdims=True)
        per_row = lse - tgt_logit                            # (tile_n, 1)

        # Padded rows (global row >= N) contribute zero to the tile sum.
        base = pl.program_id(0) * tile_n
        row = base + lax.broadcasted_iota(jnp.int32, (tile_n, 1), 0)
        per_row = jnp.where(row < n_real, per_row, 0.0)

        tile_sum = jnp.sum(per_row)                          # scalar, f32
        loss_ref[...] = jnp.broadcast_to(tile_sum, loss_ref.shape).astype(
            loss_ref.dtype)

    return loss_kernel


def _logits_kernel(ids_ref, table_ref, logits_ref):
    """Inference path: gather only (no softmax / loss work)."""
    tile_n, v_pad = logits_ref.shape
    tok = ids_ref[...]                                       # (tile_n, 1) int32
    lane = lax.broadcasted_iota(jnp.int32, (tile_n, v_pad), 1)
    one_hot = (lane == tok).astype(table_ref.dtype)
    logits_ref[...] = jnp.dot(one_hot, table_ref[...],
                              preferred_element_type=jnp.float32,
                              precision=lax.Precision.HIGHEST
                              ).astype(logits_ref.dtype)


def _choose_tile(n, tile_n):
    # Megacore-aware: aim for >= 2 grid steps so a v7x can split tiles across
    # both TensorCores; cap at tile_n; keep the sublane dim a multiple of 8.
    tile = min(tile_n, max(8, _round_up(-(-n // 2), 8)))
    return _round_up(tile, 8)


def bigram_forward(idx, table, targets=None, *, tile_n=1024):
    """Pallas equivalent of Bigram_Language_Model.forward(idx, targets)."""
    B, T = idx.shape
    V = table.shape[0]
    N = B * T

    V_pad = _round_up(max(V, 128), 128)
    tile = _choose_tile(N, tile_n)

    # VMEM budget guard (matters for big vocab / v7x's 64 MiB VMEM): resident
    # table + double-buffered id and logits blocks.
    def _vmem_bytes(t):
        return (V_pad * V_pad * table.dtype.itemsize
                + 2 * t * 2 * 4            # packed ids, double-buffered
                + 2 * t * V_pad * 4        # logits tile, double-buffered
                + 2 * 8 * 128 * 4)         # per-tile loss block
    while tile > 8 and _vmem_bytes(tile) > 24 * 1024 * 1024:
        tile = _round_up(tile // 2, 8)
    # TODO(synk): for vocab sizes where the full (V_pad, V_pad) table no longer
    # fits VMEM (~2k+ on v7x), tile the vocab axis with a second grid dim
    # instead of keeping the table resident.

    grid_n = -(-N // tile)
    N_pad = grid_n * tile
    pad = N_pad - N

    # TODO(synk): in a real training loop, pad the table once at init instead
    # of per forward call.
    table_p = jnp.zeros((V_pad, V_pad), table.dtype).at[:V, :V].set(table)

    idx_flat = idx.reshape(N).astype(jnp.int32)
    cparams = pltpu.CompilerParams(dimension_semantics=("parallel",))

    if targets is None:
        ids = jnp.pad(idx_flat, (0, pad))[:, None]                    # (N_pad, 1)
        logits_pad = pl.pallas_call(
            _logits_kernel,
            out_shape=jax.ShapeDtypeStruct((N_pad, V_pad), table.dtype),
            grid_spec=pltpu.PrefetchScalarGridSpec(
                num_scalar_prefetch=0,
                grid=(grid_n,),
                in_specs=[
                    pl.BlockSpec((tile, 1), lambda i: (i, 0)),        # token ids
                    pl.BlockSpec((V_pad, V_pad), lambda i: (0, 0)),   # table (resident)
                ],
                out_specs=pl.BlockSpec((tile, V_pad), lambda i: (i, 0)),
            ),
            compiler_params=cparams,
        )(ids, table_p)
        # PyTorch returns (B, T, C) logits and loss=None on this path.
        return logits_pad[:N, :V].reshape(B, T, V), None

    tgt_flat = targets.reshape(N).astype(jnp.int32)
    ids = jnp.pad(jnp.stack([idx_flat, tgt_flat], axis=-1),
                  ((0, pad), (0, 0)))                                 # (N_pad, 2)

    logits_pad, loss_tiles = pl.pallas_call(
        _make_loss_kernel(V, N),
        out_shape=(
            jax.ShapeDtypeStruct((N_pad, V_pad), table.dtype),
            jax.ShapeDtypeStruct((grid_n, 8, 128), jnp.float32),      # per-tile sums
        ),
        grid_spec=pltpu.PrefetchScalarGridSpec(
            num_scalar_prefetch=0,
            grid=(grid_n,),
            in_specs=[
                pl.BlockSpec((tile, 2), lambda i: (i, 0)),            # packed (idx, tgt)
                pl.BlockSpec((V_pad, V_pad), lambda i: (0, 0)),       # table (resident)
            ],
            out_specs=(
                pl.BlockSpec((tile, V_pad), lambda i: (i, 0)),        # logits
                pl.BlockSpec((1, 8, 128), lambda i: (i, 0, 0)),       # tile loss sum
            ),
        ),
        compiler_params=cparams,
    )(ids, table_p)

    # grid_n scalars -> mean over the true token count (padded rows already
    # zeroed inside the kernel).
    loss = jnp.sum(loss_tiles[:, 0, 0]) / N
    # PyTorch returns logits.view(B*T, C) and a scalar loss on this path.
    return logits_pad[:N, :V], loss


def bigram_next_logits(idx, table):
    """Generation fast path: logits for the last position only (B rows, not B*T)."""
    logits, _ = bigram_forward(idx[:, -1:], table, None)
    return logits[:, 0, :]                                            # (B, V)


if __name__ == "__main__":
    # Small, deterministic setup (char-level vocab, toy batch).
    V = 65          # unique_chars
    B, T = 2, 8     # batch, sequence length

    key = jax.random.PRNGKey(0)
    k_table, k_idx, k_tgt = jax.random.split(key, 3)

    # nn.Embedding default init: N(0, 1).
    table = jax.random.normal(k_table, (V, V), dtype=jnp.float32)
    idx = jax.random.randint(k_idx, (B, T), 0, V, dtype=jnp.int32)
    targets = jax.random.randint(k_tgt, (B, T), 0, V, dtype=jnp.int32)

    # Training path (default tile choice gives grid_n=2 here, exercising the
    # multi-tile / megacore-parallel layout).
    logits, loss = bigram_forward(idx, table, targets)
    logits = jax.block_until_ready(logits)
    loss = jax.block_until_ready(loss)

    # Pure-JAX reference.
    ref_logits = table[idx.reshape(-1)]                               # (B*T, V)
    ref_lse = jax.nn.logsumexp(ref_logits, axis=-1)                   # (B*T,)
    ref_tgt = jnp.take_along_axis(
        ref_logits, targets.reshape(-1, 1), axis=-1)[:, 0]            # (B*T,)
    ref_loss = jnp.mean(ref_lse - ref_tgt)

    assert logits.shape == (B * T, V)
    assert jnp.allclose(logits, ref_logits, atol=1e-5, rtol=1e-5)
    assert jnp.allclose(loss, ref_loss, atol=1e-5, rtol=1e-5)

    # targets=None branch (inference path): (B, T, C) logits, no loss.
    logits_nt, loss_nt = bigram_forward(idx, table, None)
    logits_nt = jax.block_until_ready(logits_nt)
    assert logits_nt.shape == (B, T, V)
    assert loss_nt is None
    assert jnp.allclose(logits_nt.reshape(B * T, V), ref_logits, atol=1e-5)

    # Generation fast path: only the last position per batch row.
    nxt = jax.block_until_ready(bigram_next_logits(idx, table))
    assert nxt.shape == (B, V)
    assert jnp.allclose(nxt, table[idx[:, -1]], atol=1e-5)

    # TODO(synk): generate()'s multinomial sampling loop stays in host-side JAX
    # (jax.random.categorical over bigram_next_logits output).

    print("KERNEL_OK")
</pallas_src>

<mosaic_0001>
module attributes {stable_mosaic.version = 11 : i64} {
  func.func @loss_kernel(%arg0: i32, %arg1: memref<8x2xi32, #tpu.memory_space<vmem>>, %arg2: memref<128x128xf32, #tpu.memory_space<vmem>>, %arg3: memref<8x128xf32, #tpu.memory_space<vmem>>, %arg4: memref<1x8x128xf32, #tpu.memory_space<vmem>>) attributes {dimension_semantics = [#tpu.dimension_semantics<parallel>], iteration_bounds = array<i64: 2>, scalar_prefetch = 0 : i64, scratch_operands = 0 : i64, tpu.core_type = #tpu.core_type<tc>, window_params = [{transform_indices = @transform_0, window_bounds = array<i64: 8, 2>}, {pipeline_mode = #tpu.pipeline_mode<synchronous>, transform_indices = @transform_1, window_bounds = array<i64: 128, 128>}, {transform_indices = @transform_2, window_bounds = array<i64: 8, 128>}, {transform_indices = @transform_3, window_bounds = array<i64: 1, 8, 128>}]} {
    %c0 = arith.constant 0 : index
    %c0_0 = arith.constant 0 : index
    %0 = vector.load %arg1[%c0, %c0_0] : memref<8x2xi32, #tpu.memory_space<vmem>>, vector<8x2xi32>
    %1 = vector.extract_strided_slice %0 {offsets = [0, 0], sizes = [8, 1], strides = [1, 1]} : vector<8x2xi32> to vector<8x1xi32>
    %2 = vector.extract_strided_slice %0 {offsets = [0, 1], sizes = [8, 1], strides = [1, 1]} : vector<8x2xi32> to vector<8x1xi32>
    %3 = tpu.iota {dimensions = array<i32: 1>} : vector<8x128xi32>
    %4 = vector.broadcast %1 : vector<8x1xi32> to vector<8x128xi32>
    %5 = arith.cmpi eq, %3, %4 : vector<8x128xi32>
    %6 = arith.extui %5 : vector<8x128xi1> to vector<8x128xi32>
    %7 = arith.sitofp %6 : vector<8x128xi32> to vector<8x128xf32>
    %c0_1 = arith.constant 0 : index
    %c0_2 = arith.constant 0 : index
    %8 = vector.load %arg2[%c0_1, %c0_2] : memref<128x128xf32, #tpu.memory_space<vmem>>, vector<128x128xf32>
    %cst = arith.constant dense<0.000000e+00> : vector<8x128xf32>
    %9 = tpu.matmul %7, %8, %cst {dimension_numbers = #tpu.dot_dimension_numbers<[1], [0], [0], [1], [0, 0, 1, 1], [], []>, precision = #tpu.contract_precision<fp32>} : vector<8x128xf32>, vector<128x128xf32>, vector<8x128xf32> -> vector<8x128xf32>
    %c0_3 = arith.constant 0 : index
    %c0_4 = arith.constant 0 : index
    %10 = vector.load %arg3[%c0_3, %c0_4] : memref<8x128xf32, #tpu.memory_space<vmem>>, vector<8x128xf32>
    tpu.vector_store %arg3[%c0_3, %c0_4], %9 {strides = array<i32>} : memref<8x128xf32, #tpu.memory_space<vmem>>, vector<8x128xf32>,
    %c65_i32 = arith.constant 65 : i32
    %11 = vector.broadcast %c65_i32 : i32 to vector<8x128xi32>
    %12 = arith.cmpi slt, %3, %11 : vector<8x128xi32>
    %cst_5 = arith.constant -1.000000e+30 : f32
    %13 = vector.broadcast %cst_5 : f32 to vector<8x128xf32>
    %14 = arith.select %12, %9, %13 : vector<8x128xi1>, vector<8x128xf32>
    %cst_6 = arith.constant dense<0xFF800000> : vector<8xf32>
    %15 = vector.multi_reduction <maximumf>, %14, %cst_6 [1] : vector<8x128xf32> to vector<8xf32>
    %16 = vector.shape_cast %15 : vector<8xf32> to vector<8x1xf32>
    %17 = vector.broadcast %16 : vector<8x1xf32> to vector<8x128xf32>
    %18 = arith.subf %14, %17 : vector<8x128xf32>
    %19 = math.exp %18 : vector<8x128xf32>
    %cst_7 = arith.constant dense<0.000000e+00> : vector<8xf32>
    %20 = vector.multi_reduction <add>, %19, %cst_7 [1] : vector<8x128xf32> to vector<8xf32>
    %21 = vector.shape_cast %20 : vector<8xf32> to vector<8x1xf32>
    %22 = math.log %21 : vector<8x1xf32>
    %23 = arith.addf %22, %16 : vector<8x1xf32>
    %24 = vector.broadcast %2 : vector<8x1xi32> to vector<8x128xi32>
    %25 = arith.cmpi eq, %3, %24 : vector<8x128xi32>
    %cst_8 = arith.constant 0.000000e+00 : f32
    %26 = vector.broadcast %cst_8 : f32 to vector<8x128xf32>
    %27 = arith.select %25, %9, %26 : vector<8x128xi1>, vector<8x128xf32>
    %cst_9 = arith.constant dense<0.000000e+00> : vector<8xf32>
    %28 = vector.multi_reduction <add>, %27, %cst_9 [1] : vector<8x128xf32> to vector<8xf32>
    %29 = vector.shape_cast %28 : vector<8xf32> to vector<8x1xf32>
    %30 = arith.subf %23, %29 : vector<8x1xf32>
    %c8_i32 = arith.constant 8 : i32
    %31 = arith.muli %arg0, %c8_i32 : i32
    %32 = tpu.iota {dimensions = array<i32: 0>} : vector<8x1xi32>
    %33 = vector.broadcast %31 : i32 to vector<8x1xi32>
    %34 = arith.addi %33, %32 : vector<8x1xi32>
    %c16_i32 = arith.constant 16 : i32
    %35 = vector.broadcast %c16_i32 : i32 to vector<8x1xi32>
    %36 = arith.cmpi slt, %34, %35 : vector<8x1xi32>
    %cst_10 = arith.constant 0.000000e+00 : f32
    %37 = vector.broadcast %cst_10 : f32 to vector<8x1xf32>
    %38 = arith.select %36, %30, %37 : vector<8x1xi1>, vector<8x1xf32>
    %39 = vector.shape_cast %38 : vector<8x1xf32> to vector<1x8x1xf32>
    %cst_11 = arith.constant dense<0.000000e+00> : vector<1xf32>
    %40 = vector.multi_reduction <add>, %39, %cst_11 [1, 2] : vector<1x8x1xf32> to vector<1xf32>
    %41 = vector.shape_cast %40 : vector<1xf32> to vector<1x1x1xf32>
    %42 = vector.extract %41[0, 0, 0] : f32 from vector<1x1x1xf32>
    %43 = vector.broadcast %42 : f32 to vector<1x8x128xf32>
    %c0_12 = arith.constant 0 : index
    %c0_13 = arith.constant 0 : index
    %c0_14 = arith.constant 0 : index
    %44 = vector.load %arg4[%c0_12, %c0_13, %c0_14] : memref<1x8x128xf32, #tpu.memory_space<vmem>>, vector<1x8x128xf32>
    tpu.vector_store %arg4[%c0_12, %c0_13, %c0_14], %43 {strides = array<i32>} : memref<1x8x128xf32, #tpu.memory_space<vmem>>, vector<1x8x128xf32>,
    return
  }
  func.func @transform_0(%arg0: i32) -> (i32, i32) {
    %c0_i32 = arith.constant 0 : i32
    %c0_i32_0 = arith.constant 0 : i32
    return %arg0, %c0_i32 : i32, i32
  }
  func.func @transform_1(%arg0: i32) -> (i32, i32) {
    %c0_i32 = arith.constant 0 : i32
    %c0_i32_0 = arith.constant 0 : i32
    %c0_i32_1 = arith.constant 0 : i32
    return %c0_i32, %c0_i32_0 : i32, i32
  }
  func.func @transform_2(%arg0: i32) -> (i32, i32) {
    %c0_i32 = arith.constant 0 : i32
    %c0_i32_0 = arith.constant 0 : i32
    return %arg0, %c0_i32 : i32, i32
  }
  func.func @transform_3(%arg0: i32) -> (i32, i32, i32) {
    %c0_i32 = arith.constant 0 : i32
    %c0_i32_0 = arith.constant 0 : i32
    %c0_i32_1 = arith.constant 0 : i32
    return %arg0, %c0_i32, %c0_i32_0 : i32, i32, i32
  }
}

</mosaic_0001>

<bundles_post_ra>
// kernel: tpu_custom_call.1
= control target key start
LH: loop header
LB: loop body
LE: loop exit
PB: predicated region body
PF: predicated region fallthrough
CT: control target
= control target key end

     0   :  { %9 = vsyncpa [#allocation3], 0  ;;  %s2116_s0 = inlined_call_operand.vmem [shape: s32[16,2], index: 0, kind: input, shape index: {}]   ;;  %s2117_s1 = inlined_call_operand.hbm [shape: f32[128,128], index: 1, kind: input, shape index: {}]   ;;  %s2118_s2 = inlined_call_operand.hbm [shape: f32[16,128], index: 2, kind: output, shape index: {0}]   ;;  %s2119_s3 = inlined_call_operand.hbm [shape: f32[2,8,128], index: 3, kind: output, shape index: {1}]  }
   0x1   :  { %10 = vsyncpa [#allocation4], 0 }
   0x2   :  { %12 = vsyncpa [#allocation4 + $0x1], 0 }
   0x3   :  { %13 = vsyncpa [#allocation7], 0 }
   0x4   :  { %15 = vsyncpa [#allocation7 + $0x1], 0  ;;  %s1589_s12 = smov 0   ;;  %s1591_s13 = smov 0  }
   0x5   :  { %s1593_s14 = smov 0   ;;  %s1595_s15 = smov 0  }
   0x6 LB: > { %s1610_s16 = sadd.s32 4294967295, %s1557_s15   ;;  %s1034_s17 = sadd.s32 4294967294, %s1557_s15   ;;  %s1557_s15 = sphi %s1595_s15, %s2127_s15   ;;  %s1553_s14 = sphi %s1593_s14, %s2126_s14   ;;  %s1549_s13 = sphi %s1591_s13, %s2125_s13   ;;  %s1545_s12 = sphi %s1589_s12, %s2124_s12  }
   0x7   : > { %s1614_s18 = sadd.s32 1, %s1557_s15   ;;  %s75_s19 = sadd.s32 1, %s1553_s14 }
   0x8   : > { %s72_s20 = ssub.s32 %s1557_s15, %s1614_s18  ;;  %p85_p0 = scmp.ne.s32.totalorder %s1553_s14, %s1549_s13 }
   0x9   : > { %p73_p1 = scmp.eq.s32.totalorder %s72_s20, 0  ;;  %p86_p2 = scmp.eq.s32.totalorder %s1610_s16, 1 }
   0xa   : > { %p91_p3 = scmp.ne.s32.totalorder %s1549_s13, %s1545_s12  ;;  %p92_p4 = scmp.eq.s32.totalorder %s1034_s17, 1 }
   0xb   : > { %s1625_s21 = scalar_select %p73_p1, %s1553_s14, %s75_s19  }
   0xc   : > { %p1627_p5 = por %p86_p2, %p85_p0  ;;  %p1631_p6 = por %p92_p4, %p91_p3 }
   0xd   : > { %p1035_p7 = scmp.ge.s32.totalorder %s1557_s15, 1  ;;  %p125_p8 = scmp.lt.s32.totalorder %s1557_s15, 3 }
   0xe   : > { %s2121_s23 = scalar_select %p1631_p6, 1, 0 }
   0xf   : > { %p1387_p9 = scmp.eq.s32.totalorder %s1610_s16, 0  ;;  %p1638_p10 = pnand %p1035_p7, %p125_p8 }
  0x10   : > { %s1559_s25 = smov [#allocation2]  }
  0x11   : > { %s137_s26 = sshll.u32 %s1559_s25, 4  ;;  %p1376_p11 = pneg %p1638_p10  ;;  %s138_s26 = int_to_ptr.vmem [resolvable:$true] %s137_s26 }
  0x12   : > { %s1448_s27 = scalar_lea.vmem %s138_s26, 2048  ;;  %p1456_p3 = scmp.lt.s32.totalorder %s138_s26, %s138_s26 }
  0x13   : > { %p1377_p12 = pnand %p1387_p9, %p1376_p11  ;;  %p1449_p0 = scmp.ne.s32.totalorder %s138_s26, %s1448_s27 }
  0x14   : > { %p1457_p4 = scmp.lt.s32.totalorder %s1448_s27, %s1448_s27 }
  0x15   : > { %p1439_p13 = pneg %p1377_p12 }
  0x16   : > { %p1458_p6 = por %p1457_p4, %p1456_p3 }
  0x17   : > { %p1451_p1 = pnand %p1449_p0, %p1439_p13 }
  0x19   : > { %p1452_p2 = pneg %p1451_p1 }
  0x1b   : > { %p1459_p7 = pnand %p1458_p6, %p1452_p2 }
  0x1d   : > { %1462 = shalt.err (!%p1459_p7)
}
  0x1e   : > { %s1560_s28 = smov 128   ;;  %s1561_s29 = smov 8  }
  0x1f   : > { %1379 = dma.hbm_to_vmem [thread:$0]  (!%p1377_p12), %s2117_s1, 2048, %s138_s26, [#allocation3], %s1560_s28, %s1560_s28, %s1561_s29  }
  0x20   : > { %160 = sbr.rel (%p1638_p10) target bundleno = 973 (0x3cd), region = 28 }
  0x25   : > { %1532 = dma.done.wait (%p1387_p9), [#allocation3], 2048  }
  0x26   : > { %1534 = vsyncadd (%p1387_p9), [#allocation3], 4294965248  ;;  %p188_p8 = scmp.lt.s32.totalorder %s1610_s16, 1  ;;  %v1562_v0 = vmov 0   ;;  %v1563_v1 = vmov 0.0   ;;  %vm1564_vm0 = vmmov 0  }
  0x27   : > { %1430 = vset.pattern.permute.xlu0 %v1562_v0  ;;  %1191 = vmatprep.subr.mxu1 %v1563_v1  ;;  %v216_v3 = vld [vmem:[#allocation2 + $0x78] sm:$0xff]  ;;  %v215_v4 = vld [vmem:[#allocation2 + $0x70] sm:$0xff]  ;;  %v214_v7 = vld [vmem:[#allocation2 + $0x68] sm:$0xff]  ;;  %s2041_s10 = sand.u32 1, %s1549_s13   ;;  %s1047_s19 = sshll.u32 %s1610_s16, 3  ;;  %vm886_vm5 = vcmask 7168  }
  0x28   : > { %s189_s5 = scalar_select %p188_p8, %s1610_s16, 1  ;;  %1156 = vmatprep.subr.mxu0 %v1563_v1  ;;  %1223 = vmatprep.mubr.msk.f32.mxu1 %vm1564_vm0, %v1563_v1  ;;  %v1669_v5 = vand.u32 4294901760, %v216_v3  ;;  %v1671_v6 = vand.u32 4294901760, %v215_v4  ;;  %v213_v8 = vld [vmem:[#allocation2 + $0x60] sm:$0xff]  ;;  %v212_v9 = vld [vmem:[#allocation2 + $0x58] sm:$0xff]  ;;  %v1673_v10 = vand.u32 4294901760, %v214_v7 }
  0x29   : > { %1188 = vmatprep.mubr.msk.f32.mxu0 %vm1564_vm0, %v1563_v1  ;;  %v1675_v11 = vand.u32 4294901760, %v213_v8  ;;  %v1677_v12 = vand.u32 4294901760, %v212_v9  ;;  %v211_v13 = vld [vmem:[#allocation2 + $0x50] sm:$0xff]  ;;  %v210_v14 = vld [vmem:[#allocation2 + $0x48] sm:$0xff]  ;;  %v209_v15 = vld [vmem:[#allocation2 + $0x40] sm:$0xff]  ;;  %s1040_s11 = sshll.u32 %s2041_s10, 3 }
  0x2a   : > { %s1042_s6 = sshll.u32 %s189_s5, 3  ;;  %v1680_v16 = vsub.f32 %v216_v3, %v1669_v5  ;;  %v1683_v17 = vsub.f32 %v215_v4, %v1671_v6  ;;  %1157 = vmatpush3.msra.mxu0 %v1669_v5  ;;  %v1686_v18 = vand.u32 4294901760, %v211_v13  ;;  %v1688_v19 = vand.u32 4294901760, %v210_v14  ;;  %v208_v36 = vld [vmem:[#allocation2 + $0x38] sm:$0xff]  ;;  %v207_v37 = vld [vmem:[#allocation2 + $0x30] sm:$0xff]  ;;  %v206_v41 = vld [vmem:[#allocation2 + $0x28] sm:$0xff] }
  0x2b   : > { %s191_s9 = scalar_lea.vmem %s2116_s0, %s1042_s6  ;;  %v1691_v20 = vsub.f32 %v214_v7, %v1673_v10  ;;  %v1694_v21 = vsub.f32 %v213_v8, %v1675_v11  ;;  %v1697_v22 = vsub.f32 %v212_v9, %v1677_v12  ;;  %1158 = vmatprep.subr.mxu0 %v1563_v1  ;;  %v1700_v23 = vand.u32 4294901760, %v209_v15  ;;  %v205_v43 = vld [vmem:[#allocation2 + $0x20] sm:$0xff]  ;;  %v204_v51 = vld [vmem:[#allocation2 + $0x18] sm:$0xff]  ;;  %v203_v57 = vld [vmem:[#allocation2 + $0x10] sm:$0xff]  ;;  %s2047_s17 = scalar_lea.vmem [#allocation5], %s1040_s11 }
  0x2c   : > { %v1666_v2 = vld [vmem:[%s191_s9] sm:$0xff]  ;;  %v311_v24 = vand.u32 4294901760, %v1680_v16  ;;  %v318_v25 = vand.u32 4294901760, %v1683_v17  ;;  %v1705_v26 = vsub.f32 %v211_v13, %v1686_v18  ;;  %1159 = vmatpush3.msra.mxu0 %v1671_v6  ;;  %v1712_v29 = vsub.f32 %v210_v14, %v1688_v19  ;;  %v202_v63 = vld [vmem:[#allocation2 + $0x8] sm:$0xff]  ;;  %s1050_s20 = sshll.u32 %s1610_s16, 7  ;;  %s918_s27 = sshll.u32 %s2047_s17, 4  ;;  %s919_s27 = int_to_ptr.vmem [resolvable:$true] %s918_s27 }
  0x2d   : > { %196 = vperm.xlu0 %1430, %v1666_v2   ;;  %v325_v27 = vand.u32 4294901760, %v1691_v20  ;;  %v332_v28 = vand.u32 4294901760, %v1694_v21  ;;  %1160 = vmatprep.subr.mxu0 %v1563_v1  ;;  %v339_v32 = vand.u32 4294901760, %v1697_v22  ;;  %v1728_v35 = vsub.f32 %v209_v15, %v1700_v23  ;;  %v201_v9 = vld [vmem:[#allocation2] sm:$0xff]  ;;  %s916_s26 = scalar_lea.hbm %s2118_s2, %s1050_s20  ;;  %s900_s28 = scalar_lea.sflag [#allocation4], %s2041_s10 }
  0x2e   : > { %v312_v30 = vsub.f32 %v1680_v16, %v311_v24  ;;  %v319_v31 = vsub.f32 %v1683_v17, %v318_v25  ;;  %1161 = vmatpush3.msra.mxu0 %v1673_v10  ;;  %v346_v34 = vand.u32 4294901760, %v1705_v26  ;;  %v353_v42 = vand.u32 4294901760, %v1712_v29  ;;  %s1463_s29 = scalar_lea.vmem %s919_s27, 128  ;;  %s1567_s30 = smov [#allocation5]  }
  0x2f   : > { %v326_v33 = vsub.f32 %v1691_v20, %v325_v27  ;;  %1162 = vmatprep.subr.mxu0 %v1563_v1  ;;  %v333_v40 = vsub.f32 %v1694_v21, %v332_v28  ;;  %v340_v45 = vsub.f32 %v1697_v22, %v339_v32  ;;  %v1739_v46 = vand.u32 4294901760, %v208_v36  ;;  %p1464_p6 = scmp.ne.s32.totalorder %s919_s27, %s1463_s29  ;;  %s1467_s4 = sshll.u32 %s1567_s30, 4  ;;  %s1468_s4 = int_to_ptr.vmem [resolvable:$false] %s1467_s4 }
  0x30   : > { %v313_v38 = vand.u32 4294901760, %v312_v30  ;;  %v320_v39 = vand.u32 4294901760, %v319_v31  ;;  %1163 = vmatpush3.msra.mxu0 %v1675_v11  ;;  %v1742_v47 = vand.u32 4294901760, %v207_v37  ;;  %v347_v48 = vsub.f32 %v1705_v26, %v346_v34  ;;  %s1469_s5 = scalar_lea.vmem %s1468_s4, 256  ;;  %p1470_p11 = scmp.lt.s32.totalorder %s919_s27, %s1468_s4 }
  0x31   : > { %1164 = vmatprep.subr.mxu0 %v1563_v1  ;;  %v327_v44 = vand.u32 4294901760, %v326_v33  ;;  %v360_v49 = vand.u32 4294901760, %v1728_v35  ;;  %v1750_v50 = vand.u32 4294901760, %v206_v41  ;;  %v334_v52 = vand.u32 4294901760, %v333_v40  ;;  %p1465_p9 = pnand %p1464_p6, %p1627_p5  ;;  %p1471_p12 = scmp.lt.s32.totalorder %s1469_s5, %s1463_s29 }
  0x32   : > { %1192 = vmatpush3.msra.mxu1 %v313_v38  ;;  %1165 = vmatpush3.msra.mxu0 %v1677_v12  ;;  %v1753_v53 = vsub.f32 %v208_v36, %v1739_v46  ;;  %v1756_v54 = vsub.f32 %v207_v37, %v1742_v47  ;;  %v1759_v55 = vand.u32 4294901760, %v205_v43  ;;  %v354_v56 = vsub.f32 %v1712_v29, %v353_v42 }
  0x33   : > { %1193 = vmatprep.subr.mxu1 %v1563_v1  ;;  %1166 = vmatprep.subr.mxu0 %v1563_v1  ;;  %v341_v58 = vand.u32 4294901760, %v340_v45  ;;  %v1768_v60 = vsub.f32 %v206_v41, %v1750_v50  ;;  %v1771_v61 = vand.u32 4294901760, %v204_v51  ;;  %v361_v62 = vsub.f32 %v1728_v35, %v360_v49  ;;  %p1466_p10 = pneg %p1465_p9  ;;  %p1472_p13 = por %p1471_p12, %p1470_p11 }
  0x34   : > { %1194 = vmatpush3.msra.mxu1 %v320_v39  ;;  %1167 = vmatpush3.msra.mxu0 %v1686_v18  ;;  %v367_v59 = vand.u32 4294901760, %v1753_v53  ;;  %v348_v0 = vand.u32 4294901760, %v347_v48  ;;  %v374_v3 = vand.u32 4294901760, %v1756_v54  ;;  %v1780_v4 = vsub.f32 %v205_v43, %v1759_v55 }
  0x35   : > { %1195 = vmatprep.subr.mxu1 %v1563_v1  ;;  %1168 = vmatprep.subr.mxu0 %v1563_v1  ;;  %v1783_v7 = vand.u32 4294901760, %v203_v57  ;;  %v355_v8 = vand.u32 4294901760, %v354_v56  ;;  %v381_v14 = vand.u32 4294901760, %v1768_v60  ;;  %v1792_v15 = vsub.f32 %v204_v51, %v1771_v61  ;;  %p1473_p0 = pnand %p1472_p13, %p1466_p10 }
  0x36   : > { %1196 = vmatpush3.msra.mxu1 %v327_v44  ;;  %1169 = vmatpush3.msra.mxu0 %v1688_v19  ;;  %v368_v13 = vsub.f32 %v1753_v53, %v367_v59  ;;  %v1795_v30 = vand.u32 4294901760, %v202_v63  ;;  %v362_v31 = vand.u32 4294901760, %v361_v62  ;;  %v375_v33 = vsub.f32 %v1756_v54, %v374_v3 }
  0x37   : > { %1197 = vmatprep.subr.mxu1 %v1563_v1  ;;  %1170 = vmatprep.subr.mxu0 %v1563_v1  ;;  %v388_v36 = vand.u32 4294901760, %v1780_v4  ;;  %v1804_v37 = vsub.f32 %v203_v57, %v1783_v7  ;;  %v1807_v38 = vand.u32 4294901760, %v201_v9  ;;  %v382_v40 = vsub.f32 %v1768_v60, %v381_v14 }
  0x38   : > { %1198 = vmatpush3.msra.mxu1 %v334_v52  ;;  %1171 = vmatpush3.msra.mxu0 %v1700_v23  ;;  %v369_v39 = vand.u32 4294901760, %v368_v13  ;;  %v395_v41 = vand.u32 4294901760, %v1792_v15  ;;  %v1816_v43 = vsub.f32 %v202_v63, %v1795_v30  ;;  %v376_v44 = vand.u32 4294901760, %v375_v33 }
  0x39   : > { %1199 = vmatprep.subr.mxu1 %v1563_v1  ;;  %1172 = vmatprep.subr.mxu0 %v1563_v1  ;;  %v389_v45 = vsub.f32 %v1780_v4, %v388_v36  ;;  %v402_v48 = vand.u32 4294901760, %v1804_v37  ;;  %v1826_v51 = vsub.f32 %v201_v9, %v1807_v38  ;;  %v383_v52 = vand.u32 4294901760, %v382_v40 }
  0x3a   : > { %1200 = vmatpush3.msra.mxu1 %v341_v58  ;;  %1173 = vmatpush3.msra.mxu0 %v1739_v46  ;;  %v396_v56 = vsub.f32 %v1792_v15, %v395_v41  ;;  %v409_v57 = vand.u32 4294901760, %v1816_v43  ;;  %v193_v40 = vlaneseq }
  0x3b   : > { %1201 = vmatprep.subr.mxu1 %v1563_v1  ;;  %1174 = vmatprep.subr.mxu0 %v1563_v1  ;;  %v390_v58 = vand.u32 4294901760, %v389_v45  ;;  %v403_v62 = vsub.f32 %v1804_v37, %v402_v48  ;;  %v416_v63 = vand.u32 4294901760, %v1826_v51 }
  0x3c   : > { %1202 = vmatpush3.msra.mxu1 %v348_v0  ;;  %1175 = vmatpush3.msra.mxu0 %v1742_v47  ;;  %v397_v0 = vand.u32 4294901760, %v396_v56  ;;  %v1566_v56 = vmov 1.0  }
  0x3d   : > { %1203 = vmatprep.subr.mxu1 %v1563_v1  ;;  %1176 = vmatprep.subr.mxu0 %v1563_v1  ;;  %v404_v9 = vand.u32 4294901760, %v403_v62  ;;  %v417_v13 = vsub.f32 %v1826_v51, %v416_v63 }
  0x3e   : > { %1204 = vmatpush3.msra.mxu1 %v355_v8  ;;  %1177 = vmatpush3.msra.mxu0 %v1750_v50  ;;  %v410_v8 = vsub.f32 %v1816_v43, %v409_v57 }
  0x3f   : > { %1205 = vmatprep.subr.mxu1 %v1563_v1  ;;  %1178 = vmatprep.subr.mxu0 %v1563_v1  ;;  %v418_v33 = vand.u32 4294901760, %v417_v13 }
  0x40   : > { %1206 = vmatpush3.msra.mxu1 %v362_v31  ;;  %1179 = vmatpush3.msra.mxu0 %v1759_v55  ;;  %v411_v31 = vand.u32 4294901760, %v410_v8 }
  0x41   : > { %1207 = vmatprep.subr.mxu1 %v1563_v1  ;;  %1180 = vmatprep.subr.mxu0 %v1563_v1 }
  0x42   : > { %1208 = vmatpush3.msra.mxu1 %v369_v39  ;;  %1181 = vmatpush3.msra.mxu0 %v1771_v61  ;;  %v1565_v39 = vmov 1  }
  0x43   : > { %1209 = vmatprep.subr.mxu1 %v1563_v1  ;;  %1182 = vmatprep.subr.mxu0 %v1563_v1 }
  0x44   : > { %1210 = vmatpush3.msra.mxu1 %v376_v44  ;;  %1183 = vmatpush3.msra.mxu0 %v1783_v7  ;;  %v1863_v44 = vand.u32 127, %v193_v40 }
  0x45   : > { %1211 = vmatprep.subr.mxu1 %v1563_v1  ;;  %1184 = vmatprep.subr.mxu0 %v1563_v1 }
  0x46   : > { %1212 = vmatpush3.msra.mxu1 %v383_v52  ;;  %1185 = vmatpush3.msra.mxu0 %v1795_v30  ;;  %vm859_vm2 = vcmp.lt.s32.totalorder %v1863_v44, 65 }
  0x47   : > { %1213 = vmatprep.subr.mxu1 %v1563_v1  ;;  %1186 = vmatprep.subr.mxu0 %v1563_v1 }
  0x48   : > { %1214 = vmatpush3.msra.mxu1 %v390_v58  ;;  %1187 = vmatpush3.msra.mxu0 %v1807_v38 }
  0x49   : > { %1215 = vmatprep.subr.mxu1 %v1563_v1  ;;  %1226 = vmatprep.subr.mxu0 %v1563_v1 }
  0x4a   : > { %1216 = vmatpush3.msra.mxu1 %v397_v0  ;;  %1431 = vset.pattern.permute.xlu1 %v1565_v39 }
  0x4b   : > { %1217 = vmatprep.subr.mxu1 %v1563_v1  ;;  %1432 = vset.pattern.permute.xlu0 %v1565_v39 }
  0x4c   : > { %1218 = vmatpush3.msra.mxu1 %v404_v9  ;;  %872 = vperm.xlu1 %1431, %v1666_v2  }
  0x4d   : > { %1219 = vmatprep.subr.mxu1 %v1563_v1 }
  0x4e   : > { %1220 = vmatpush3.msra.mxu1 %v411_v31 }
  0x4f   : > { %1221 = vmatprep.subr.mxu1 %v1563_v1 }
  0x50   : > { %1222 = vmatpush3.msra.mxu1 %v418_v33 }
  0x51   : > { %1261 = vmatprep.subr.mxu1 %v1563_v1 }
  0xa8   : > { %v1865_v45 = vpop.permute.xlu0 %196 }
  0xa9   : > { %vm198_vm1 = vcmp.eq.s32.totalorder %v1863_v44, %v1865_v45 }
  0xaa   : > { %v1043_v52 = vsel %vm198_vm1, 1.0, %v1563_v1  ;;  %1224 = vmatmul.mubr.msk.f32.vlgmr.msra.gmra.mxu1 %vm198_vm1, %v1566_v56 }
  0xab   : > { %v1877_v2 = vsub.f32 %v1043_v52, %v1043_v52  ;;  %1262 = vmatpush3.msra.mxu1 %v1669_v5  ;;  %1293 = vmatprep.mubr.msk.f32.mxu1 %vm1564_vm0, %v1563_v1 }
  0xac   : > { %1263 = vmatprep.subr.mxu1 %v1563_v1 }
  0xad   : > { %1264 = vmatpush3.msra.mxu1 %v1671_v6  ;;  %v300_v58 = vand.u32 4294901760, %v1877_v2 }
  0xae   : > { %1265 = vmatprep.subr.mxu1 %v1563_v1 }
  0xaf   : > { %1266 = vmatpush3.msra.mxu1 %v1673_v10  ;;  %v301_v62 = vsub.f32 %v1877_v2, %v300_v58 }
  0xb0   : > { %1267 = vmatprep.subr.mxu1 %v1563_v1 }
  0xb1   : > { %1268 = vmatpush3.msra.mxu1 %v1675_v11  ;;  %v302_v0 = vand.u32 4294901760, %v301_v62 }
  0xb2   : > { %1269 = vmatprep.subr.mxu1 %v1563_v1 }
  0xb3   : > { %1270 = vmatpush3.msra.mxu1 %v1677_v12  ;;  %1189 = vmatmul.mubr.f32.vlgmr.msra.gmra.mxu0 %v302_v0 }
  0xb4   : > { %1227 = vmatpush3.msra.mxu0 %v1680_v16  ;;  %1271 = vmatprep.subr.mxu1 %v1563_v1 }
  0xb5   : > { %1228 = vmatprep.subr.mxu0 %v1563_v1  ;;  %1272 = vmatpush3.msra.mxu1 %v1686_v18 }
  0xb6   : > { %1229 = vmatpush3.msra.mxu0 %v1683_v17  ;;  %1273 = vmatprep.subr.mxu1 %v1563_v1 }
  0xb7   : > { %1230 = vmatprep.subr.mxu0 %v1563_v1  ;;  %1274 = vmatpush3.msra.mxu1 %v1688_v19 }
  0xb8   : > { %1231 = vmatpush3.msra.mxu0 %v1691_v20  ;;  %1275 = vmatprep.subr.mxu1 %v1563_v1 }
  0xb9   : > { %1232 = vmatprep.subr.mxu0 %v1563_v1  ;;  %1276 = vmatpush3.msra.mxu1 %v1700_v23 }
  0xba   : > { %1233 = vmatpush3.msra.mxu0 %v1694_v21  ;;  %1277 = vmatprep.subr.mxu1 %v1563_v1 }
  0xbb   : > { %1234 = vmatprep.subr.mxu0 %v1563_v1  ;;  %1278 = vmatpush3.msra.mxu1 %v1739_v46 }
  0xbc   : > { %1235 = vmatpush3.msra.mxu0 %v1697_v22  ;;  %1279 = vmatprep.subr.mxu1 %v1563_v1 }
  0xbd   : > { %1236 = vmatprep.subr.mxu0 %v1563_v1  ;;  %1280 = vmatpush3.msra.mxu1 %v1742_v47 }
  0xbe   : > { %1237 = vmatpush3.msra.mxu0 %v1705_v26  ;;  %1281 = vmatprep.subr.mxu1 %v1563_v1 }
  0xbf   : > { %1238 = vmatprep.subr.mxu0 %v1563_v1  ;;  %1282 = vmatpush3.msra.mxu1 %v1750_v50 }
  0xc0   : > { %1239 = vmatpush3.msra.mxu0 %v1712_v29  ;;  %1283 = vmatprep.subr.mxu1 %v1563_v1 }
  0xc1   : > { %1240 = vmatprep.subr.mxu0 %v1563_v1  ;;  %1284 = vmatpush3.msra.mxu1 %v1759_v55 }
  0xc2   : > { %1241 = vmatpush3.msra.mxu0 %v1728_v35  ;;  %1285 = vmatprep.subr.mxu1 %v1563_v1 }
  0xc3   : > { %1242 = vmatprep.subr.mxu0 %v1563_v1  ;;  %1286 = vmatpush3.msra.mxu1 %v1771_v61 }
  0xc4   : > { %1243 = vmatpush3.msra.mxu0 %v1753_v53  ;;  %1287 = vmatprep.subr.mxu1 %v1563_v1 }
  0xc5   : > { %1244 = vmatprep.subr.mxu0 %v1563_v1  ;;  %1288 = vmatpush3.msra.mxu1 %v1783_v7 }
  0xc6   : > { %1245 = vmatpush3.msra.mxu0 %v1756_v54  ;;  %1289 = vmatprep.subr.mxu1 %v1563_v1 }
  0xc7   : > { %1246 = vmatprep.subr.mxu0 %v1563_v1  ;;  %1290 = vmatpush3.msra.mxu1 %v1795_v30 }
  0xc8   : > { %1247 = vmatpush3.msra.mxu0 %v1768_v60  ;;  %1291 = vmatprep.subr.mxu1 %v1563_v1 }
  0xc9   : > { %1248 = vmatprep.subr.mxu0 %v1563_v1  ;;  %1292 = vmatpush3.msra.mxu1 %v1807_v38 }
  0xca   : > { %1249 = vmatpush3.msra.mxu0 %v1780_v4  ;;  %1294 = vmatmul.mubr.f32.vlgmr.msra.gmra.mxu1 %v300_v58 }
  0xcb   : > { %1331 = vmatprep.subr.mxu1 %v1563_v1  ;;  %1250 = vmatprep.subr.mxu0 %v1563_v1 }
  0xcc   : > { %1332 = vmatpush3.msra.mxu1 %v1669_v5  ;;  %1251 = vmatpush3.msra.mxu0 %v1792_v15 }
  0xcd   : > { %1333 = vmatprep.subr.mxu1 %v1563_v1  ;;  %1252 = vmatprep.subr.mxu0 %v1563_v1 }
  0xce   : > { %1334 = vmatpush3.msra.mxu1 %v1671_v6  ;;  %1253 = vmatpush3.msra.mxu0 %v1804_v37 }
  0xcf   : > { %1335 = vmatprep.subr.mxu1 %v1563_v1  ;;  %1254 = vmatprep.subr.mxu0 %v1563_v1 }
  0xd0   : > { %1336 = vmatpush3.msra.mxu1 %v1673_v10  ;;  %1255 = vmatpush3.msra.mxu0 %v1816_v43 }
  0xd1   : > { %1337 = vmatprep.subr.mxu1 %v1563_v1  ;;  %1256 = vmatprep.subr.mxu0 %v1563_v1 }
  0xd2   : > { %1338 = vmatpush3.msra.mxu1 %v1675_v11  ;;  %1257 = vmatpush3.msra.mxu0 %v1826_v51 }
  0xd3   : > { %1258 = vmatprep.mubr.msk.f32.mxu0 %vm1564_vm0, %v1563_v1  ;;  %1339 = vmatprep.subr.mxu1 %v1563_v1 }
  0xd4   : > { %1259 = vmatmul.mubr.f32.vlgmr.msra.gmra.mxu0 %v1877_v2  ;;  %1296 = vmatprep.subr.mxu0 %v1563_v1 }
  0xd5   : > { %1340 = vmatpush3.msra.mxu1 %v1677_v12  ;;  %1297 = vmatpush3.msra.mxu0 %v311_v24 }
  0xd6   : > { %1341 = vmatprep.subr.mxu1 %v1563_v1  ;;  %1298 = vmatprep.subr.mxu0 %v1563_v1 }
  0xd7   : > { %1342 = vmatpush3.msra.mxu1 %v1686_v18  ;;  %1299 = vmatpush3.msra.mxu0 %v318_v25 }
  0xd8   : > { %1343 = vmatprep.subr.mxu1 %v1563_v1  ;;  %1300 = vmatprep.subr.mxu0 %v1563_v1 }
  0xd9   : > { %1344 = vmatpush3.msra.mxu1 %v1688_v19  ;;  %1301 = vmatpush3.msra.mxu0 %v325_v27  ;;  %v873_v27 = vpop.permute.xlu1 %872 }
  0xda   : > { %1345 = vmatprep.subr.mxu1 %v1563_v1  ;;  %1302 = vmatprep.subr.mxu0 %v1563_v1  ;;  %vm874_vm3 = vcmp.eq.s32.totalorder %v1863_v44, %v873_v27 }
  0xdb   : > { %1346 = vmatpush3.msra.mxu1 %v1700_v23  ;;  %1303 = vmatpush3.msra.mxu0 %v332_v28 }
  0xdc   : > { %1347 = vmatprep.subr.mxu1 %v1563_v1  ;;  %1304 = vmatprep.subr.mxu0 %v1563_v1 }
  0xdd   : > { %1348 = vmatpush3.msra.mxu1 %v1739_v46  ;;  %1305 = vmatpush3.msra.mxu0 %v339_v32 }
  0xde   : > { %1349 = vmatprep.subr.mxu1 %v1563_v1  ;;  %1306 = vmatprep.subr.mxu0 %v1563_v1 }
  0xdf   : > { %1350 = vmatpush3.msra.mxu1 %v1742_v47  ;;  %1307 = vmatpush3.msra.mxu0 %v346_v34  ;;  %v881_v47 = vshrl.u32 %v193_v40, 7 }
  0xe0   : > { %1351 = vmatprep.subr.mxu1 %v1563_v1  ;;  %1308 = vmatprep.subr.mxu0 %v1563_v1 }
  0xe1   : > { %1352 = vmatpush3.msra.mxu1 %v1750_v50  ;;  %1309 = vmatpush3.msra.mxu0 %v353_v42 }
  0xe2   : > { %1353 = vmatprep.subr.mxu1 %v1563_v1  ;;  %1310 = vmatprep.subr.mxu0 %v1563_v1 }
  0xe3   : > { %1354 = vmatpush3.msra.mxu1 %v1759_v55  ;;  %1311 = vmatpush3.msra.mxu0 %v360_v49  ;;  %v882_v49 = vstv %s1047_s19 }
  0xe4   : > { %1355 = vmatprep.subr.mxu1 %v1563_v1  ;;  %1312 = vmatprep.subr.mxu0 %v1563_v1  ;;  %v883_v53 = vadd.s32 %v882_v49, %v881_v47 }
  0xe5   : > { %1356 = vmatpush3.msra.mxu1 %v1771_v61  ;;  %1313 = vmatpush3.msra.mxu0 %v367_v59 }
  0xe6   : > { %1357 = vmatprep.subr.mxu1 %v1563_v1  ;;  %1314 = vmatprep.subr.mxu0 %v1563_v1  ;;  %vm884_vm4 = vcmp.lt.s32.totalorder %v883_v53, 16 }
  0xe7   : > { %1358 = vmatpush3.msra.mxu1 %v1783_v7  ;;  %1315 = vmatpush3.msra.mxu0 %v374_v3 }
  0xe8   : > { %1359 = vmatprep.subr.mxu1 %v1563_v1  ;;  %1316 = vmatprep.subr.mxu0 %v1563_v1 }
  0xe9   : > { %1360 = vmatpush3.msra.mxu1 %v1795_v30  ;;  %1317 = vmatpush3.msra.mxu0 %v381_v14 }
  0xea   : > { %1361 = vmatprep.subr.mxu1 %v1563_v1  ;;  %1318 = vmatprep.subr.mxu0 %v1563_v1 }
  0xeb   : > { %1362 = vmatpush3.msra.mxu1 %v1807_v38  ;;  %1363 = vmatprep.mubr.msk.f32.mxu1 %vm1564_vm0, %v1563_v1 }
  0xec   : > { %1319 = vmatpush3.msra.mxu0 %v388_v36  ;;  %1364 = vmatmul.mubr.msk.f32.vlgmr.msra.gmra.mxu1 %vm198_vm1, %v1566_v56 }
  0xed   : > { %1320 = vmatprep.subr.mxu0 %v1563_v1  ;;  %1328 = vmatprep.mubr.msk.f32.mxu0 %vm1564_vm0, %v1563_v1 }
  0xee   : > { %1321 = vmatpush3.msra.mxu0 %v395_v41 }
  0xef   : > { %1322 = vmatprep.subr.mxu0 %v1563_v1 }
  0xf0   : > { %1323 = vmatpush3.msra.mxu0 %v402_v48 }
  0xf1   : > { %1324 = vmatprep.subr.mxu0 %v1563_v1 }
  0xf2   : > { %1325 = vmatpush3.msra.mxu0 %v409_v57 }
  0xf3   : > { %1326 = vmatprep.subr.mxu0 %v1563_v1 }
  0xf4   : > { %1327 = vmatpush3.msra.mxu0 %v416_v63 }
  0xf5   : > { %1329 = vmatmul.mubr.msk.f32.vlgmr.msra.gmra.mxu0 %vm198_vm1, %v1566_v56 }
 0x16a   : > { %v455_v5 = vpop.f32.mrf.mxu1 }
 0x16c   : > { %v1225_v6 = vpop.f32.mrf.mxu1 }
 0x173   : > { %v304_v10 = vpop.f32.mrf.mxu0 }
 0x174   : > { %v456_v20 = vadd.f32 %v455_v5, %v304_v10 }
 0x175   : > { %v1190_v11 = vpop.f32.mrf.mxu0 }
 0x18a   : > { %v648_v12 = vpop.f32.mrf.mxu1 }
 0x18c   : > { %v1295_v16 = vpop.f32.mrf.mxu1 }
 0x194   : > { %v559_v17 = vpop.f32.mrf.mxu0 }
 0x195   : > { %v560_v1 = vadd.f32 %v559_v17, %v456_v20 }
 0x196   : > { %v1260_v18 = vpop.f32.mrf.mxu0 }
 0x197   : > { %v649_v22 = vadd.f32 %v648_v12, %v560_v1 }
 0x1ac   : > { %v854_v19 = vpop.f32.mrf.mxu1 }
 0x1ae   : > { %v1365_v21 = vpop.f32.mrf.mxu1 }
 0x1b5   : > { %v767_v23 = vpop.f32.mrf.mxu0 }
 0x1b6   : > { %v768_v24 = vadd.f32 %v767_v23, %v649_v22 }
 0x1b7   : > { %v1330_v25 = vpop.f32.mrf.mxu0 }
 0x1b8   : > { %v855_v26 = vadd.f32 %v854_v19, %v768_v24 }
 0x1ba   : > { %v860_v28 = vsel %vm859_vm2, %v855_v26, -1e+30  ;;  %858 = vst [vmem:[%s2047_s17] sm:$0xff] %v855_v26  ;;  %v875_v29 = vsel %vm874_vm3, %v855_v26, 0.0 }
 0x1bb   : > { %861 = vmax.xlane.f32.xlu0 %v860_v28 }
 0x1bf   : > { %876 = vadd.xlane.f32.xlu0 %v875_v29 }
 0x244   : > { %v862_v32 = vpop.xlane.xlu0 %861 }
 0x245   : > { %v863_v34 = vsub.f32 %v860_v28, %v862_v32 }
 0x247   : > { %v864_v35 = vmul.f32 1.442695, %v863_v34 }
 0x248   : > { %v877_v59 = vpop.xlane.xlu0 %876 }
 0x249   : > { %1433 = vpow2.f32 %v864_v35 }
 0x256   : > { %v1434_v42 = vpop.eup %1433 }
 0x257   : > { %866 = vadd.xlane.f32.xlu1 %v1434_v42 }
 0x2e0   : > { %v867_v46 = vpop.xlane.xlu1 %866 }
 0x2e1   : > { %1435 = vlog2.f32 %v867_v46 }
 0x2ee   : > { %v1436_v50 = vpop.eup %1435 }
 0x2ef   : > { %v869_v54 = vmul.f32 0.6931472, %v1436_v50 }
 0x2f1   : > { %v870_v55 = vadd.f32 %v869_v54, %v862_v32 }
 0x2f3   : > { %v878_v60 = vsub.f32 %v870_v55, %v877_v59 }
 0x2f5   : > { %v885_v61 = vsel %vm884_vm4, %v878_v60, 0.0 }
 0x2f6   : > { %v887_v3 = vsel %vm886_vm5, %v885_v61, 0.0 }
 0x2f7   : > { %888 = vadd.xlane.f32.xlu0 %v887_v3 }
 0x2f8   : > { %1476 = shalt.err (!%p1473_p0)
}
 0x2f9   : > { %s1477_s6 = scalar_lea.hbm %s916_s26, 128  ;;  %s1481_s9 = scalar_lea.hbm %s2118_s2, 256 }
 0x2fa   : > { %p1478_p1 = scmp.ne.s32.totalorder %s916_s26, %s1477_s6  ;;  %p1482_p4 = scmp.lt.s32.totalorder %s916_s26, %s2118_s2 }
 0x2fb   : > { %p1483_p7 = scmp.lt.s32.totalorder %s1481_s9, %s1477_s6 }
 0x2fc   : > { %p1479_p2 = pnand %p1478_p1, %p1627_p5 }
 0x2fd   : > { %p1484_p8 = por %p1483_p7, %p1482_p4 }
 0x2fe   : > { %p1480_p3 = pneg %p1479_p2 }
 0x300   : > { %p1485_p6 = pnand %p1484_p8, %p1480_p3 }
 0x302   : > { %1488 = shalt.err (!%p1485_p6)
}
 0x303   : > { %1372 = dma.vmem_to_hbm [thread:$0]  (%p1627_p5), %s919_s27, 128, %s916_s26, %s900_s28  }
 0x304   : > { %s187_s24 = scalar_lea.vmem [#allocation6], %s1040_s11  ;;  %s929_s28 = scalar_lea.hbm %s2119_s3, %s1050_s20 }
 0x305   : > { %s931_s25 = sshll.u32 %s187_s24, 4  ;;  %s905_s30 = scalar_lea.sflag [#allocation7], %s2041_s10  ;;  %s2075_s25 = int_to_ptr.vmem [resolvable:$true] %s931_s25 }
 0x306   : > { %s1489_s4 = scalar_lea.vmem %s2075_s25, 128  ;;  %s1568_s11 = smov [#allocation6]  }
 0x307   : > { %p1490_p9 = scmp.ne.s32.totalorder %s2075_s25, %s1489_s4  ;;  %s1493_s5 = sshll.u32 %s1568_s11, 4  ;;  %s1494_s5 = int_to_ptr.vmem [resolvable:$false] %s1493_s5 }
 0x308   : > { %s1495_s6 = scalar_lea.vmem %s1494_s5, 256  ;;  %p1496_p12 = scmp.lt.s32.totalorder %s2075_s25, %s1494_s5 }
 0x309   : > { %p1491_p10 = pnand %p1490_p9, %p1627_p5  ;;  %p1497_p13 = scmp.lt.s32.totalorder %s1495_s6, %s1489_s4 }
 0x30b   : > { %p1492_p11 = pneg %p1491_p10  ;;  %p1498_p0 = por %p1497_p13, %p1496_p12 }
 0x30d   : > { %p1499_p1 = pnand %p1498_p0, %p1492_p11 }
 0x380   : > { %v889_v4 = vpop.xlane.xlu0 %888 }
 0x381   : > { %v890_v7 = vrot.slane %v889_v4, 4 }
 0x383   : > { %v891_v14 = vadd.f32 %v890_v7, %v889_v4 }
 0x385   : > { %v892_v15 = vrot.slane %v891_v14, 2 }
 0x387   : > { %v893_v30 = vadd.f32 %v892_v15, %v891_v14 }
 0x389   : > { %v894_v36 = vrot.slane %v893_v30, 1 }
 0x38b   : > { %v895_v37 = vadd.f32 %v894_v36, %v893_v30 }
 0x38d   : > { %1366 = vpush %v895_v37 }
 0x3be   : > { %s1367_s29 = spop %1366 }
 0x3bf   : > { %v897_v38 = vstv %s1367_s29 }
 0x3c0   : > { %898 = vst [vmem:[%s187_s24] sm:$0xff] %v897_v38 }
 0x3c1   : > { %1502 = shalt.err (!%p1499_p1)
}
 0x3c2   : > { %s1503_s16 = scalar_lea.hbm %s929_s28, 128  ;;  %s1507_s7 = scalar_lea.hbm %s2119_s3, 256 }
 0x3c3   : > { %p1504_p2 = scmp.ne.s32.totalorder %s929_s28, %s1503_s16  ;;  %p1508_p7 = scmp.lt.s32.totalorder %s929_s28, %s2119_s3 }
 0x3c4   : > { %p1509_p8 = scmp.lt.s32.totalorder %s1507_s7, %s1503_s16 }
 0x3c5   : > { %p1505_p3 = pnand %p1504_p2, %p1627_p5 }
 0x3c6   : > { %p1510_p6 = por %p1509_p8, %p1508_p7 }
 0x3c7   : > { %p1506_p4 = pneg %p1505_p3 }
 0x3c9   : > { %p1511_p9 = pnand %p1510_p6, %p1506_p4 }
 0x3cb   : > { %1514 = shalt.err (!%p1511_p9)
}
 0x3cc   : > { %1373 = dma.vmem_to_hbm [thread:$0]  (%p1627_p5), %s2075_s25, 128, %s929_s28, %s905_s30  }
 0x3cd PF: > { %p1389_p10 = scmp.ge.s32.totalorder %s1557_s15, 2  ;;  %s943_s17 = sand.u32 1, %s1545_s12  }
 0x3ce   : > { %p2123_p11 = scmp.ne.s32.totalorder %s2121_s23, 0  ;;  %s944_s19 = scalar_lea.sflag [#allocation4], %s943_s17 }
 0x3d0   : > { %p1381_p12 = pnand %p1389_p10, %p2123_p11 }
 0x3d2   : > { %p1382_p13 = pneg %p1381_p12 }
 0x3d4   : > { %1536 = dma.done.wait (%p1382_p13), %s944_s19, 128  }
 0x3d5   : > { %1538 = vsyncadd (%p1382_p13), %s944_s19, 4294967168  ;;  %s953_s24 = scalar_lea.sflag [#allocation7], %s943_s17 }
 0x3d6   : > { %1540 = dma.done.wait (%p1382_p13), %s953_s24, 128  }
 0x3d7   : > { %1542 = vsyncadd (%p1382_p13), %s953_s24, 4294967168  ;;  %p18_p5 = scmp.ge.s32.totalorder %s1614_s18, 4   ;;  %s2124_s12 = smov %s1549_s13 }
 0x3d8   : > { %s2125_s13 = smov %s1553_s14  ;;  %s2126_s14 = smov %s1625_s21 }
 0x3d9   : > { %s2127_s15 = smov %s1614_s18  ;;  %20 = sbr.rel (!%p18_p5) target bundleno = 6 (0x6), region = 85 }
 0x3de   :  { %958 = vsyncpa [#allocation3], 1 }
 0x3df   :  { %960 = vsyncpa [#allocation3 + $0x1], 1 }
 0x3e0   :  { %961 = vsyncpa [#allocation4], 1 }
 0x3e1   :  { %963 = vsyncpa [#allocation4 + $0x1], 1 }
 0x3e2   :  { %964 = vsyncpa [#allocation7], 1 }
 0x3e3   :  { %966 = vsyncpa [#allocation7 + $0x1], 1 }

</bundles_post_ra>
